<compile_context>
chip_gen: v7x
topology: tpu7x:2x2x1
jax: 0.10.0
libtpu: 0.0.40
codegen_flags: <defaults>
</compile_context>

<pallas_src>
import functools

import numpy as np
import jax
import jax.numpy as jnp
from jax import lax
from jax.experimental import pallas as pl
from jax.experimental.pallas import tpu as pltpu  # noqa: F401  (TPU backend assumed)


# ---------------------------------------------------------------------------
# Pallas kernel: conv1 -> BatchNorm(batch stats) -> ReLU -> conv2, fully fused.
# ---------------------------------------------------------------------------
def _fused_kernel(x1_ref, w1_ref, rsel_ref, w2_ref, gamma_ref, beta_ref,
                  gsum_ref, gbc_ref, a1_ref, y2_ref, *, inv_count, kh):
    # ---- conv1: one bf16 MXU matmul (H-taps pre-gathered in the wrapper, width
    #      direction folded into a block-Toeplitz weight), f32 accumulation. ----
    y1 = jnp.dot(x1_ref[...], w1_ref[...], preferred_element_type=jnp.float32)
    # y1: [N*H1, W1*C1] f32; lane layout is (w1-major, c1-minor) -> lane-dense.

    # ---- BatchNorm2d with batch statistics (track_running_stats=False). ----
    # One pass: per-channel sum / sum-of-squares via row reductions (XLU) plus a
    # tiny group-sum matmul; the affine is folded into a single FMA.
    row_sum = jnp.sum(y1, axis=0, keepdims=True)                  # [1, W1*C1]
    row_sumsq = jnp.sum(y1 * y1, axis=0, keepdims=True)           # [1, W1*C1]
    s1 = jnp.dot(row_sum, gsum_ref[...], preferred_element_type=jnp.float32)
    s2 = jnp.dot(row_sumsq, gsum_ref[...], preferred_element_type=jnp.float32)
    mean = s1 * inv_count                                         # [1, C1]
    var = s2 * inv_count - mean * mean                            # biased (PyTorch BN)
    scale_c = gamma_ref[...] * lax.rsqrt(var + 1e-5)              # [1, C1]  (EUP)
    bias_c = beta_ref[...] - mean * scale_c                       # [1, C1]
    # Broadcast per-channel scale/bias to the (w1, c1) lane layout (tiny matmuls,
    # hoisted once; no per-use broadcast_in_dim in the hot path).
    scale = jnp.dot(scale_c, gbc_ref[...], preferred_element_type=jnp.float32)
    bias = jnp.dot(bias_c, gbc_ref[...], preferred_element_type=jnp.float32)
    a1 = jnp.maximum(y1 * scale + bias, 0.0)                      # BN + ReLU
    a1_ref[...] = a1                                              # lane-dense store

    # ---- conv2: kh H-taps.  Each tap = exact 0/1 row-selection matmul (stride-2
    #      rows + zero padding); the selected slabs are lane-concatenated (128-lane
    #      aligned) and pushed through ONE bf16 block-Toeplitz MXU matmul with
    #      K = kh*W1*C1 and f32 accumulation. ----
    a1_b = a1.astype(jnp.bfloat16)
    rows = [jnp.dot(rsel_ref[dy], a1_b, preferred_element_type=jnp.float32)
            for dy in range(kh)]                                  # kh x [N*H2, W1*C1]
    rows_cat = jnp.concatenate(rows, axis=1).astype(jnp.bfloat16)  # [N*H2, kh*W1*C1]
    y2_ref[...] = jnp.dot(rows_cat, w2_ref[...],
                          preferred_element_type=jnp.float32)     # lane-dense store


def _full_block_spec(shape):
    return pl.BlockSpec(shape, lambda: (0,) * len(shape))


# ---------------------------------------------------------------------------
# Wrapper-side constant construction (layout plumbing, done once / traced once).
# ---------------------------------------------------------------------------
def _out_size(n, k=3, stride=2, pad=1):
    return (n + 2 * pad - k) // stride + 1


def _width_toeplitz(w_oihw, dy, in_w, out_w, *, stride=2, pad=1):
    """Fold the width direction of a conv into a matmul weight.

    Returns T of shape [in_w*Cin, out_w*Cout] with
      T[xw*Cin + ci, wo*Cout + co] = w[co, ci, dy, xw - (stride*wo - pad)]
    whenever that kw offset is valid, else 0 (== zero padding in W).
    """
    c_out, c_in, kh, kw = w_oihw.shape
    xw = np.repeat(np.arange(in_w), c_in)                 # row -> input w
    ci = np.tile(np.arange(c_in), in_w)                   # row -> input channel
    wo = np.repeat(np.arange(out_w), c_out)               # col -> output w
    co = np.tile(np.arange(c_out), out_w)                 # col -> output channel
    dx = xw[:, None] - (stride * wo[None, :] - pad)
    valid = (dx >= 0) & (dx < kw)
    flat = ((co[None, :] * c_in + ci[:, None]) * kh + dy) * kw + np.clip(dx, 0, kw - 1)
    vals = jnp.take(w_oihw.reshape(-1), jnp.asarray(flat))
    return jnp.where(jnp.asarray(valid), vals, 0.0)


def _row_select(n_batch, in_h, out_h, dy, *, stride=2, pad=1):
    """0/1 matrix selecting the stride-2 H rows (with zero padding) for tap dy."""
    r = np.zeros((n_batch * out_h, n_batch * in_h), np.float32)
    for n in range(n_batch):
        for ho in range(out_h):
            hin = stride * ho + dy - pad
            if 0 <= hin < in_h:
                r[n * out_h + ho, n * in_h + hin] = 1.0
    return r


def _kaiming_normal(key, shape):
    """nn.init.kaiming_normal_ default: fan_in, gain=sqrt(2)."""
    c_out, c_in, kh, kw = shape
    fan_in = c_in * kh * kw
    std = (2.0 / fan_in) ** 0.5
    return std * jax.random.normal(key, shape, dtype=jnp.float32)


def init_params(key, growth_rate=8):
    c1 = 2 * growth_rate
    c2 = 4 * growth_rate
    k1, k2 = jax.random.split(key)
    return {
        "w1": _kaiming_normal(k1, (c1, 3, 3, 3)),      # PyTorch OIHW, bias=False
        "w2": _kaiming_normal(k2, (c2, c1, 3, 3)),     # PyTorch OIHW, bias=False
        "gamma": jnp.ones((c1,), jnp.float32),         # BatchNorm2d affine defaults
        "beta": jnp.zeros((c1,), jnp.float32),
    }


def densenet_initial_layers(x_nchw, params):
    """Forward pass. Returns (x, prev_scale_x) in NCHW, matching PyTorch."""
    N, c_in, H, W = x_nchw.shape
    c1 = params["w1"].shape[0]
    c2 = params["w2"].shape[0]
    kh = 3
    H1, W1 = _out_size(H), _out_size(W)        # conv1 output spatial
    H2, W2 = _out_size(H1), _out_size(W1)      # conv2 output spatial

    # conv1 LHS: gather the 3 H-taps (stride 2, pad 1) of the input.  Only the H
    # direction is expanded (~1x data volume), NOT a 9x im2col matrix.
    x_nhwc = jnp.transpose(x_nchw, (0, 2, 3, 1)).astype(jnp.float32)
    xp = jnp.pad(x_nhwc, ((0, 0), (1, 1), (0, 0), (0, 0)))        # pad H only
    slabs = [xp[:, dy:dy + 2 * H1:2, :, :].reshape(N * H1, W * c_in)
             for dy in range(kh)]
    x1 = jnp.concatenate(slabs, axis=1)                            # [N*H1, kh*W*Cin]

    # Block-Toeplitz weights (width direction of each conv folded into the matmul).
    w1cat = jnp.concatenate(
        [_width_toeplitz(params["w1"], dy, W, W1) for dy in range(kh)], axis=0)
    # conv2: concatenate the kh per-tap Toeplitz weights along K so the in-kernel
    # conv2 is a single matmul with K = kh*W1*C1.
    w2cat = jnp.concatenate(
        [_width_toeplitz(params["w2"], dy, W1, W2) for dy in range(kh)], axis=0)

    # Pad the conv1 contraction dim to a multiple of 8 (sublane alignment).
    k1 = x1.shape[1]
    k1p = ((k1 + 7) // 8) * 8
    if k1p != k1:
        x1 = jnp.pad(x1, ((0, 0), (0, k1p - k1)))
        w1cat = jnp.pad(w1cat, ((0, k1p - k1), (0, 0)))

    # Constant helper matrices (row selection for conv2 H-taps, BN group-sum /
    # channel-broadcast).
    rsel = jnp.asarray(np.stack([_row_select(N, H1, H2, dy) for dy in range(kh)]))
    gsum_np = np.kron(np.ones((W1, 1), np.float32), np.eye(c1, dtype=np.float32))
    gsum = jnp.asarray(gsum_np)            # [W1*C1, C1]  per-channel group sum
    gbc = jnp.asarray(gsum_np.T)           # [C1, W1*C1]  per-channel broadcast

    gamma = params["gamma"].reshape(1, c1).astype(jnp.float32)
    beta = params["beta"].reshape(1, c1).astype(jnp.float32)
    inv_count = 1.0 / float(N * H1 * W1)

    kernel = functools.partial(_fused_kernel, inv_count=inv_count, kh=kh)
    a1_flat, y2_flat = pl.pallas_call(
        kernel,
        out_shape=(
            jax.ShapeDtypeStruct((N * H1, W1 * c1), jnp.float32),
            jax.ShapeDtypeStruct((N * H2, W2 * c2), jnp.float32),
        ),
        in_specs=[
            _full_block_spec((N * H1, k1p)),
            _full_block_spec((k1p, W1 * c1)),
            _full_block_spec((kh, N * H2, N * H1)),
            _full_block_spec((kh * W1 * c1, W2 * c2)),
            _full_block_spec((1, c1)),
            _full_block_spec((1, c1)),
            _full_block_spec((W1 * c1, c1)),
            _full_block_spec((c1, W1 * c1)),
        ],
        out_specs=(
            _full_block_spec((N * H1, W1 * c1)),
            _full_block_spec((N * H2, W2 * c2)),
        ),
    )(
        x1.astype(jnp.bfloat16),          # bf16 MXU operands, f32 accumulation
        w1cat.astype(jnp.bfloat16),
        rsel.astype(jnp.bfloat16),        # 0/1 -> exact in bf16
        w2cat.astype(jnp.bfloat16),
        gamma, beta, gsum, gbc,
    )

    prev_scale_x = jnp.transpose(a1_flat.reshape(N, H1, W1, c1), (0, 3, 1, 2))
    x_out = jnp.transpose(y2_flat.reshape(N, H2, W2, c2), (0, 3, 1, 2))
    return x_out, prev_scale_x


# ---------------------------------------------------------------------------
# Pure-JAX reference (mirrors the kernel's bf16 quantization points).
# ---------------------------------------------------------------------------
def _round_bf16(a):
    return a.astype(jnp.bfloat16).astype(jnp.float32)


def _reference(x_nchw, params):
    x = _round_bf16(x_nchw)
    w1 = _round_bf16(params["w1"])
    w2 = _round_bf16(params["w2"])
    dn = ("NCHW", "OIHW", "NCHW")
    y1 = lax.conv_general_dilated(x, w1, (2, 2), ((1, 1), (1, 1)),
                                  dimension_numbers=dn)
    mean = jnp.mean(y1, axis=(0, 2, 3), keepdims=True)
    var = jnp.mean((y1 - mean) ** 2, axis=(0, 2, 3), keepdims=True)
    gamma = params["gamma"].reshape(1, -1, 1, 1)
    beta = params["beta"].reshape(1, -1, 1, 1)
    a1 = jnp.maximum((y1 - mean) * lax.rsqrt(var + 1e-5) * gamma + beta, 0.0)
    y2 = lax.conv_general_dilated(_round_bf16(a1), w2, (2, 2), ((1, 1), (1, 1)),
                                  dimension_numbers=dn)
    return y2, a1


if __name__ == "__main__":
    key = jax.random.PRNGKey(0)
    k_x, k_p, k_g, k_b = jax.random.split(key, 4)

    # conv1 has in_channels=3 (fixed by the module); batch=2, spatial 16x16.
    x = jax.random.normal(k_x, (2, 3, 16, 16), dtype=jnp.float32)
    params = init_params(k_p, growth_rate=8)
    # Exercise non-default BatchNorm affine parameters.
    params["gamma"] = 1.0 + 0.1 * jax.random.normal(k_g, (16,), jnp.float32)
    params["beta"] = 0.1 * jax.random.normal(k_b, (16,), jnp.float32)

    fwd = jax.jit(densenet_initial_layers)
    out, prev = fwd(x, params)
    out = jax.block_until_ready(out)
    prev = jax.block_until_ready(prev)

    assert out.shape == (2, 32, 4, 4), out.shape
    assert prev.shape == (2, 16, 8, 8), prev.shape

    ref_out, ref_prev = _reference(x, params)
    assert jnp.allclose(prev, ref_prev, atol=5e-3, rtol=5e-3), \
        float(jnp.max(jnp.abs(prev - ref_prev)))
    assert jnp.allclose(out, ref_out, atol=2e-2, rtol=2e-2), \
        float(jnp.max(jnp.abs(out - ref_out)))

    print("KERNEL_OK")
</pallas_src>

<mosaic_0001>
module attributes {stable_mosaic.version = 11 : i64} {
  func.func @_fused_kernel(%arg0: memref<16x144xbf16, #tpu.memory_space<vmem>>, %arg1: memref<144x128xbf16, #tpu.memory_space<vmem>>, %arg2: memref<3x8x16xbf16, #tpu.memory_space<vmem>>, %arg3: memref<384x128xbf16, #tpu.memory_space<vmem>>, %arg4: memref<1x16xf32, #tpu.memory_space<vmem>>, %arg5: memref<1x16xf32, #tpu.memory_space<vmem>>, %arg6: memref<128x16xf32, #tpu.memory_space<vmem>>, %arg7: memref<16x128xf32, #tpu.memory_space<vmem>>, %arg8: memref<16x128xf32, #tpu.memory_space<vmem>>, %arg9: memref<8x128xf32, #tpu.memory_space<vmem>>) attributes {dimension_semantics = [], scalar_prefetch = 0 : i64, scratch_operands = 0 : i64, tpu.core_type = #tpu.core_type<tc>} {
    %c0 = arith.constant 0 : index
    %c0_0 = arith.constant 0 : index
    %0 = vector.load %arg0[%c0, %c0_0] : memref<16x144xbf16, #tpu.memory_space<vmem>>, vector<16x144xbf16>
    %c0_1 = arith.constant 0 : index
    %c0_2 = arith.constant 0 : index
    %1 = vector.load %arg1[%c0_1, %c0_2] : memref<144x128xbf16, #tpu.memory_space<vmem>>, vector<144x128xbf16>
    %cst = arith.constant dense<0.000000e+00> : vector<16x128xf32>
    %2 = tpu.matmul %0, %1, %cst {dimension_numbers = #tpu.dot_dimension_numbers<[1], [0], [0], [1], [0, 0, 1, 1], [], []>} : vector<16x144xbf16>, vector<144x128xbf16>, vector<16x128xf32> -> vector<16x128xf32>
    %cst_3 = arith.constant dense<0.000000e+00> : vector<128xf32>
    %3 = vector.multi_reduction <add>, %2, %cst_3 [0] : vector<16x128xf32> to vector<128xf32>
    %4 = vector.shape_cast %3 : vector<128xf32> to vector<1x128xf32>
    %5 = arith.mulf %2, %2 : vector<16x128xf32>
    %cst_4 = arith.constant dense<0.000000e+00> : vector<128xf32>
    %6 = vector.multi_reduction <add>, %5, %cst_4 [0] : vector<16x128xf32> to vector<128xf32>
    %7 = vector.shape_cast %6 : vector<128xf32> to vector<1x128xf32>
    %c0_5 = arith.constant 0 : index
    %c0_6 = arith.constant 0 : index
    %8 = vector.load %arg6[%c0_5, %c0_6] : memref<128x16xf32, #tpu.memory_space<vmem>>, vector<128x16xf32>
    %cst_7 = arith.constant dense<0.000000e+00> : vector<1x16xf32>
    %9 = tpu.matmul %4, %8, %cst_7 {dimension_numbers = #tpu.dot_dimension_numbers<[1], [0], [0], [1], [0, 0, 1, 1], [], []>} : vector<1x128xf32>, vector<128x16xf32>, vector<1x16xf32> -> vector<1x16xf32>
    %c0_8 = arith.constant 0 : index
    %c0_9 = arith.constant 0 : index
    %10 = vector.load %arg6[%c0_8, %c0_9] : memref<128x16xf32, #tpu.memory_space<vmem>>, vector<128x16xf32>
    %cst_10 = arith.constant dense<0.000000e+00> : vector<1x16xf32>
    %11 = tpu.matmul %7, %10, %cst_10 {dimension_numbers = #tpu.dot_dimension_numbers<[1], [0], [0], [1], [0, 0, 1, 1], [], []>} : vector<1x128xf32>, vector<128x16xf32>, vector<1x16xf32> -> vector<1x16xf32>
    %cst_11 = arith.constant 7.812500e-03 : f32
    %12 = vector.broadcast %cst_11 : f32 to vector<1x16xf32>
    %13 = arith.mulf %9, %12 : vector<1x16xf32>
    %cst_12 = arith.constant 7.812500e-03 : f32
    %14 = vector.broadcast %cst_12 : f32 to vector<1x16xf32>
    %15 = arith.mulf %11, %14 : vector<1x16xf32>
    %16 = arith.mulf %13, %13 : vector<1x16xf32>
    %17 = arith.subf %15, %16 : vector<1x16xf32>
    %c0_13 = arith.constant 0 : index
    %c0_14 = arith.constant 0 : index
    %18 = vector.load %arg4[%c0_13, %c0_14] : memref<1x16xf32, #tpu.memory_space<vmem>>, vector<1x16xf32>
    %cst_15 = arith.constant 9.99999974E-6 : f32
    %19 = vector.broadcast %cst_15 : f32 to vector<1x16xf32>
    %20 = arith.addf %17, %19 : vector<1x16xf32>
    %21 = math.rsqrt %20 : vector<1x16xf32>
    %22 = arith.mulf %18, %21 : vector<1x16xf32>
    %c0_16 = arith.constant 0 : index
    %c0_17 = arith.constant 0 : index
    %23 = vector.load %arg5[%c0_16, %c0_17] : memref<1x16xf32, #tpu.memory_space<vmem>>, vector<1x16xf32>
    %24 = arith.mulf %13, %22 : vector<1x16xf32>
    %25 = arith.subf %23, %24 : vector<1x16xf32>
    %c0_18 = arith.constant 0 : index
    %c0_19 = arith.constant 0 : index
    %26 = vector.load %arg7[%c0_18, %c0_19] : memref<16x128xf32, #tpu.memory_space<vmem>>, vector<16x128xf32>
    %cst_20 = arith.constant dense<0.000000e+00> : vector<1x128xf32>
    %27 = tpu.matmul %22, %26, %cst_20 {dimension_numbers = #tpu.dot_dimension_numbers<[1], [0], [0], [1], [0, 0, 1, 1], [], []>} : vector<1x16xf32>, vector<16x128xf32>, vector<1x128xf32> -> vector<1x128xf32>
    %c0_21 = arith.constant 0 : index
    %c0_22 = arith.constant 0 : index
    %28 = vector.load %arg7[%c0_21, %c0_22] : memref<16x128xf32, #tpu.memory_space<vmem>>, vector<16x128xf32>
    %cst_23 = arith.constant dense<0.000000e+00> : vector<1x128xf32>
    %29 = tpu.matmul %25, %28, %cst_23 {dimension_numbers = #tpu.dot_dimension_numbers<[1], [0], [0], [1], [0, 0, 1, 1], [], []>} : vector<1x16xf32>, vector<16x128xf32>, vector<1x128xf32> -> vector<1x128xf32>
    %30 = vector.broadcast %27 : vector<1x128xf32> to vector<16x128xf32>
    %31 = arith.mulf %2, %30 : vector<16x128xf32>
    %32 = vector.broadcast %29 : vector<1x128xf32> to vector<16x128xf32>
    %33 = arith.addf %31, %32 : vector<16x128xf32>
    %cst_24 = arith.constant 0.000000e+00 : f32
    %34 = vector.broadcast %cst_24 : f32 to vector<16x128xf32>
    %35 = arith.maximumf %33, %34 : vector<16x128xf32>
    %c0_25 = arith.constant 0 : index
    %c0_26 = arith.constant 0 : index
    %36 = vector.load %arg8[%c0_25, %c0_26] : memref<16x128xf32, #tpu.memory_space<vmem>>, vector<16x128xf32>
    tpu.vector_store %arg8[%c0_25, %c0_26], %35 {strides = array<i32>} : memref<16x128xf32, #tpu.memory_space<vmem>>, vector<16x128xf32>,
    %37 = arith.truncf %35 : vector<16x128xf32> to vector<16x128xbf16>
    %c0_27 = arith.constant 0 : index
    %c0_28 = arith.constant 0 : index
    %c0_29 = arith.constant 0 : index
    %38 = vector.load %arg2[%c0_27, %c0_28, %c0_29] : memref<3x8x16xbf16, #tpu.memory_space<vmem>>, vector<1x8x16xbf16>
    %39 = vector.shape_cast %38 : vector<1x8x16xbf16> to vector<8x16xbf16>
    %cst_30 = arith.constant dense<0.000000e+00> : vector<8x128xf32>
    %40 = tpu.matmul %39, %37, %cst_30 {dimension_numbers = #tpu.dot_dimension_numbers<[1], [0], [0], [1], [0, 0, 1, 1], [], []>} : vector<8x16xbf16>, vector<16x128xbf16>, vector<8x128xf32> -> vector<8x128xf32>
    %c1 = arith.constant 1 : index
    %c0_31 = arith.constant 0 : index
    %c0_32 = arith.constant 0 : index
    %41 = vector.load %arg2[%c1, %c0_31, %c0_32] : memref<3x8x16xbf16, #tpu.memory_space<vmem>>, vector<1x8x16xbf16>
    %42 = vector.shape_cast %41 : vector<1x8x16xbf16> to vector<8x16xbf16>
    %cst_33 = arith.constant dense<0.000000e+00> : vector<8x128xf32>
    %43 = tpu.matmul %42, %37, %cst_33 {dimension_numbers = #tpu.dot_dimension_numbers<[1], [0], [0], [1], [0, 0, 1, 1], [], []>} : vector<8x16xbf16>, vector<16x128xbf16>, vector<8x128xf32> -> vector<8x128xf32>
    %c2 = arith.constant 2 : index
    %c0_34 = arith.constant 0 : index
    %c0_35 = arith.constant 0 : index
    %44 = vector.load %arg2[%c2, %c0_34, %c0_35] : memref<3x8x16xbf16, #tpu.memory_space<vmem>>, vector<1x8x16xbf16>
    %45 = vector.shape_cast %44 : vector<1x8x16xbf16> to vector<8x16xbf16>
    %cst_36 = arith.constant dense<0.000000e+00> : vector<8x128xf32>
    %46 = tpu.matmul %45, %37, %cst_36 {dimension_numbers = #tpu.dot_dimension_numbers<[1], [0], [0], [1], [0, 0, 1, 1], [], []>} : vector<8x16xbf16>, vector<16x128xbf16>, vector<8x128xf32> -> vector<8x128xf32>
    %47 = tpu.concatenate %40, %43, %46 in 1 : vector<8x128xf32>, vector<8x128xf32>, vector<8x128xf32> -> vector<8x384xf32>
    %48 = arith.truncf %47 : vector<8x384xf32> to vector<8x384xbf16>
    %c0_37 = arith.constant 0 : index
    %c0_38 = arith.constant 0 : index
    %49 = vector.load %arg3[%c0_37, %c0_38] : memref<384x128xbf16, #tpu.memory_space<vmem>>, vector<384x128xbf16>
    %cst_39 = arith.constant dense<0.000000e+00> : vector<8x128xf32>
    %50 = tpu.matmul %48, %49, %cst_39 {dimension_numbers = #tpu.dot_dimension_numbers<[1], [0], [0], [1], [0, 0, 1, 1], [], []>} : vector<8x384xbf16>, vector<384x128xbf16>, vector<8x128xf32> -> vector<8x128xf32>
    %c0_40 = arith.constant 0 : index
    %c0_41 = arith.constant 0 : index
    %51 = vector.load %arg9[%c0_40, %c0_41] : memref<8x128xf32, #tpu.memory_space<vmem>>, vector<8x128xf32>
    tpu.vector_store %arg9[%c0_40, %c0_41], %50 {strides = array<i32>} : memref<8x128xf32, #tpu.memory_space<vmem>>, vector<8x128xf32>,
    return
  }
}

</mosaic_0001>

<bundles_post_ra>
// kernel: densenet_initial_layers.1
= control target key start
LH: loop header
LB: loop body
LE: loop exit
PB: predicated region body
PF: predicated region fallthrough
CT: control target
= control target key end

     0   :  { %v1264_v0 = vmov 0   ;;  %v1265_v2 = vmov 0.0|0.0   ;;  %vm115_vm0 = vcmask 130048   ;;  %vm1266_vm1 = vmmov 0   ;;  %s1580_s1 = inlined_call_operand.vmem [shape: bf16[144,128], index: 1, kind: input, shape index: {}]   ;;  %s1581_s0 = inlined_call_operand.vmem [shape: bf16[16,144], index: 0, kind: input, shape index: {}]   ;;  %s1582_s6 = inlined_call_operand.vmem [shape: f32[128,16], index: 6, kind: input, shape index: {}]   ;;  %s1583_s7 = inlined_call_operand.vmem [shape: f32[16,128], index: 7, kind: input, shape index: {}]   ;;  %s1584_s4 = inlined_call_operand.vmem [shape: f32[1,16], index: 4, kind: input, shape index: {}]   ;;  %s1585_s5 = inlined_call_operand.vmem [shape: f32[1,16], index: 5, kind: input, shape index: {}]   ;;  %s1586_s3 = inlined_call_operand.vmem [shape: bf16[384,128], index: 3, kind: input, shape index: {}]   ;;  %s1587_s8 = inlined_call_operand.vmem [shape: f32[16,128], index: 8, kind: output, shape index: {0}]   ;;  %s1588_s2 = inlined_call_operand.vmem [shape: bf16[3,8,16], index: 2, kind: input, shape index: {}]   ;;  %s1589_s9 = inlined_call_operand.vmem [shape: f32[8,128], index: 9, kind: output, shape index: {1}]  }
   0x1   :  { %119 = vmatprep.subr.bf16.mxu0 %v1264_v0  ;;  %v1226_v1 = vld [vmem:[%s1580_s1] sm:$0xff]   ;;  %1168 = vmatprep.subr.bf16.mxu1 %v1265_v2  ;;  %v1227_v3 = vld [vmem:[%s1580_s1 + $0x8] sm:$0xff]   ;;  %v1228_v4 = vld [vmem:[%s1580_s1 + $0x10] sm:$0xff]   ;;  %v1267_v37 = vmov 0.0  }
   0x2   :  { %120 = vmatpush1.bf16.msra.mxu0 %v1226_v1  ;;  %v1229_v5 = vld [vmem:[%s1580_s1 + $0x18] sm:$0xff]   ;;  %v1237_v6 = vld [vmem:[%s1581_s0 + $0x4] ss:$8 sps:$4 sm:$0xff]   ;;  %v178_v10 = vld [vmem:[%s1582_s6 + $0x10] sm:$0xff]  ;;  %1078 = vmatprep.mubr.msk.f32.mxu1 %vm1266_vm1, %v1267_v37 }
   0x3   :  { %121 = vmatprep.subr.bf16.mxu0 %v1264_v0  ;;  %v176_v7 = vld [vmem:[%s1582_s6] sm:$0xff]  ;;  %v177_v8 = vld [vmem:[%s1582_s6 + $0x8] sm:$0xff]  ;;  %v179_v11 = vld [vmem:[%s1582_s6 + $0x18] sm:$0xff]  ;;  %937 = vmatprep.mubr.msk.bf16.mxu0 %vm115_vm0, %v1237_v6 }
   0x4   :  { %v1340_v9 = vpack.c.bf16 %v177_v8, %v176_v7  ;;  %v1350_v12 = vpack.c.bf16 %v179_v11, %v178_v10  ;;  %v1230_v13 = vld [vmem:[%s1580_s1 + $0x20] sm:$0xff]   ;;  %v181_v15 = vld [vmem:[%s1582_s6 + $0x28] sm:$0xff]  ;;  %v182_v18 = vld [vmem:[%s1582_s6 + $0x30] sm:$0xff] }
   0x5   :  { %v180_v14 = vld [vmem:[%s1582_s6 + $0x20] sm:$0xff]  ;;  %v1231_v17 = vld [vmem:[%s1580_s1 + $0x28] sm:$0xff]   ;;  %v183_v19 = vld [vmem:[%s1582_s6 + $0x38] sm:$0xff] }
   0x6   :  { %122 = vmatpush1.bf16.msra.mxu0 %v1227_v3  ;;  %1170 = vmatpush3.bf16.msra.mxu1 %v1340_v9  ;;  %v1363_v16 = vpack.c.bf16 %v181_v15, %v180_v14  ;;  %v1376_v20 = vpack.c.bf16 %v183_v19, %v182_v18  ;;  %v1232_v21 = vld [vmem:[%s1580_s1 + $0x30] sm:$0xff]   ;;  %v1233_v22 = vld [vmem:[%s1580_s1 + $0x38] sm:$0xff]   ;;  %v1234_v23 = vld [vmem:[%s1580_s1 + $0x40] sm:$0xff]  }
   0x7   :  { %123 = vmatprep.subr.bf16.mxu0 %v1264_v0  ;;  %1171 = vmatprep.subr.bf16.mxu1 %v1265_v2  ;;  %v1235_v24 = vld [vmem:[%s1581_s0] ss:$8 sps:$4 sm:$0xff]   ;;  %v186_v28 = vld [vmem:[%s1582_s6 + $0x50] sm:$0xff]  ;;  %v187_v29 = vld [vmem:[%s1582_s6 + $0x58] sm:$0xff] }
   0x8   :  { %v184_v25 = vld [vmem:[%s1582_s6 + $0x40] sm:$0xff]  ;;  %v185_v26 = vld [vmem:[%s1582_s6 + $0x48] sm:$0xff]  ;;  %v1184_v30 = vpack.c.bf16 %v187_v29, %v186_v28  ;;  %v190_v34 = vld [vmem:[%s1582_s6 + $0x70] sm:$0xff] }
   0x9   :  { %v1181_v27 = vpack.c.bf16 %v185_v26, %v184_v25  ;;  %v188_v31 = vld [vmem:[%s1582_s6 + $0x60] sm:$0xff]  ;;  %v189_v32 = vld [vmem:[%s1582_s6 + $0x68] sm:$0xff]  ;;  %v191_v35 = vld [vmem:[%s1582_s6 + $0x78] sm:$0xff] }
   0xa   :  { %124 = vmatpush1.bf16.msra.mxu0 %v1228_v4  ;;  %1173 = vmatpush3.bf16.msra.mxu1 %v1350_v12  ;;  %v1187_v33 = vpack.c.bf16 %v189_v32, %v188_v31  ;;  %v1190_v36 = vpack.c.bf16 %v191_v35, %v190_v34  ;;  %v343_v58 = vld [vmem:[%s1583_s7] sm:$0xff]  ;;  %v344_v59 = vld [vmem:[%s1583_s7 + $0x8] sm:$0xff]  ;;  %v1245_v18 = vld [vmem:[%s1586_s3 + $0x58] sm:$0xff]  }
   0xb   :  { %125 = vmatprep.subr.bf16.mxu0 %v1264_v0  ;;  %1174 = vmatprep.subr.bf16.mxu1 %v1265_v2  ;;  %v1217_v60 = vpack.c.bf16 %v344_v59, %v343_v58  ;;  %v336_v7 = vld [vmem:[%s1584_s4] sm:$0x1]  ;;  %v1240_v14 = vld [vmem:[%s1586_s3 + $0x48] sm:$0xff]   ;;  %v1247_v19 = vld [vmem:[%s1586_s3 + $0x18] sm:$0xff]  }
   0xc   :  { %v1241_v15 = vld [vmem:[%s1586_s3 + $0x8] sm:$0xff]  }
   0xe   :  { %126 = vmatpush1.bf16.msra.mxu0 %v1229_v5  ;;  %1176 = vmatpush3.bf16.msra.mxu1 %v1363_v16 }
   0xf   :  { %127 = vmatprep.subr.bf16.mxu0 %v1264_v0  ;;  %1177 = vmatprep.subr.bf16.mxu1 %v1265_v2 }
  0x12   :  { %128 = vmatpush1.bf16.msra.mxu0 %v1230_v13  ;;  %1179 = vmatpush3.bf16.msra.mxu1 %v1376_v20  ;;  %v1239_v13 = vld [vmem:[%s1586_s3] sm:$0xff]  }
  0x13   :  { %129 = vmatprep.subr.bf16.mxu0 %v1264_v0  ;;  %1180 = vmatprep.subr.bf16.mxu1 %v1265_v2 }
  0x16   :  { %130 = vmatpush1.bf16.msra.mxu0 %v1231_v17  ;;  %1182 = vmatpush3.bf16.msra.mxu1 %v1181_v27  ;;  %v1244_v17 = vld [vmem:[%s1586_s3 + $0x10] sm:$0xff]  }
  0x17   :  { %131 = vmatprep.subr.bf16.mxu0 %v1264_v0  ;;  %1183 = vmatprep.subr.bf16.mxu1 %v1265_v2 }
  0x1a   :  { %132 = vmatpush1.bf16.msra.mxu0 %v1232_v21  ;;  %1185 = vmatpush3.bf16.msra.mxu1 %v1184_v30  ;;  %v1250_v21 = vld [vmem:[%s1586_s3 + $0x20] sm:$0xff]  }
  0x1b   :  { %133 = vmatprep.subr.bf16.mxu0 %v1264_v0  ;;  %1186 = vmatprep.subr.bf16.mxu1 %v1265_v2 }
  0x1e   :  { %134 = vmatpush1.bf16.msra.mxu0 %v1233_v22  ;;  %1188 = vmatpush3.bf16.msra.mxu1 %v1187_v33  ;;  %v491_v22 = vlaneseq }
  0x1f   :  { %135 = vmatprep.subr.bf16.mxu0 %v1264_v0  ;;  %1189 = vmatprep.subr.bf16.mxu1 %v1265_v2 }
  0x22   :  { %136 = vmatpush1.bf16.msra.mxu0 %v1234_v23  ;;  %1191 = vmatpush3.bf16.msra.mxu1 %v1190_v36  ;;  %v492_v23 = vshrl.u32 %v491_v22, 7 }
  0x23   :  { %1216 = vmatprep.subr.bf16.mxu0 %v1265_v2  ;;  %1192 = vmatprep.subr.bf16.mxu1 %v1265_v2 }
  0x25   :  { %152 = vmatmul.mubr.bf16.vlgmr.msra.gmra.mrb[0].mxu0 %v1235_v24  ;;  %v493_v24 = vsub.s32 0, %v492_v23 }
  0x26   :  { %1120 = vmatprep.mubr.msk.f32.mxu0 %vm1266_vm1, %v1267_v37  ;;  %1218 = vmatpush3.bf16.msra.mxu0 %v1217_v60 }
  0x27   :  { %1219 = vmatprep.subr.bf16.mxu0 %v1265_v2 }
  0xf8   :  { %v1426_v38 = vpop.f32.mrb[0].mxu0 }
  0xf9   :  { %v155_v39 = vpop.f32.mrb[1].mxu0  ;;  %v167_v41 = vmul.f32 %v1426_v38, %v1426_v38 }
  0xfa   :  { %v1428_v40 = vpop.f32.mrb[2].mxu0 }
  0xfb   :  { %v160_v42 = vadd.f32 %v1428_v40, %v1426_v38  ;;  %v168_v43 = vmul.f32 %v1428_v40, %v1428_v40  ;;  %v158_v44 = vpop.f32.mrb[3].mxu0 }
  0xfc   :  { %v1249_v44 = vld [vmem:[%s1586_s3 + $0x90] sm:$0xff]  }
  0xfd   :  { %v161_v45 = vrot.slane %v160_v42, 4  ;;  %v169_v46 = vadd.f32 %v168_v43, %v167_v41  ;;  %v943_v41 = vld [vmem:[%s1588_s2 + $0x8] sm:$0xf] }
  0xfe   :  { %v1246_v43 = vld [vmem:[%s1586_s3 + $0x88] sm:$0xff]  }
  0xff   :  { %v162_v47 = vadd.f32 %v161_v45, %v160_v42  ;;  %v170_v52 = vrot.slane %v169_v46, 4  ;;  %v1243_v42 = vld [vmem:[%s1586_s3 + $0x80] sm:$0xff]   ;;  %v1251_v45 = vld [vmem:[%s1586_s3 + $0x68] sm:$0xff]  }
 0x101   :  { %v163_v48 = vrot.slane %v162_v47, 2  ;;  %v171_v53 = vadd.f32 %v170_v52, %v169_v46  ;;  %v1252_v46 = vld [vmem:[%s1586_s3 + $0x98] sm:$0xff]   ;;  %v1258_v52 = vld [vmem:[%s1586_s3 + $0xa8] sm:$0xff]  }
 0x103   :  { %v164_v49 = vadd.f32 %v163_v48, %v162_v47  ;;  %v172_v54 = vrot.slane %v171_v53, 2  ;;  %v1253_v47 = vld [vmem:[%s1586_s3 + $0x28] sm:$0xff]   ;;  %v1254_v48 = vld [vmem:[%s1586_s3 + $0x70] sm:$0xff]  }
 0x105   :  { %v165_v50 = vrot.slane %v164_v49, 1  ;;  %v173_v55 = vadd.f32 %v172_v54, %v171_v53  ;;  %v1259_v53 = vld [vmem:[%s1586_s3 + $0x38] sm:$0xff]   ;;  %v1260_v54 = vld [vmem:[%s1586_s3 + $0xb0] sm:$0xff]  }
 0x107   :  { %v166_v51 = vadd.f32 %v165_v50, %v164_v49  ;;  %v174_v56 = vrot.slane %v173_v55, 1  ;;  %v1255_v49 = vld [vmem:[%s1586_s3 + $0xa0] sm:$0xff]   ;;  %v1256_v50 = vld [vmem:[%s1586_s3 + $0x30] sm:$0xff]  }
 0x109   :  { %1079 = vmatmul.mubr.f32.vlgmr.msra.gmra.mrb[0].mxu1 %v166_v51  ;;  %v175_v57 = vadd.f32 %v174_v56, %v173_v55  ;;  %v1257_v51 = vld [vmem:[%s1586_s3 + $0x78] sm:$0xff]  }
 0x10a   :  { %1194 = vmatpush3.bf16.msra.mxu1 %v1340_v9  ;;  %1113 = vmatprep.mubr.msk.f32.mxu1 %vm1266_vm1, %v1267_v37  ;;  %v1261_v55 = vld [vmem:[%s1586_s3 + $0xb8] sm:$0xff]  }
 0x10b   :  { %1195 = vmatprep.subr.bf16.mxu1 %v1265_v2 }
 0x10e   :  { %1197 = vmatpush3.bf16.msra.mxu1 %v1350_v12  ;;  %v1238_v12 = vld [vmem:[%s1586_s3 + $0x40] sm:$0xff]  }
 0x10f   :  { %1198 = vmatprep.subr.bf16.mxu1 %v1265_v2 }
 0x112   :  { %1200 = vmatpush3.bf16.msra.mxu1 %v1363_v16  ;;  %v1242_v16 = vld [vmem:[%s1586_s3 + $0x50] sm:$0xff]  }
 0x113   :  { %1201 = vmatprep.subr.bf16.mxu1 %v1265_v2 }
 0x116   :  { %1203 = vmatpush3.bf16.msra.mxu1 %v1376_v20  ;;  %v1248_v20 = vld [vmem:[%s1586_s3 + $0x60] sm:$0xff]  }
 0x117   :  { %1204 = vmatprep.subr.bf16.mxu1 %v1265_v2 }
 0x11a   :  { %1206 = vmatpush3.bf16.msra.mxu1 %v1181_v27 }
 0x11b   :  { %1207 = vmatprep.subr.bf16.mxu1 %v1265_v2 }
 0x11e   :  { %1209 = vmatpush3.bf16.msra.mxu1 %v1184_v30 }
 0x11f   :  { %1210 = vmatprep.subr.bf16.mxu1 %v1265_v2 }
 0x122   :  { %1212 = vmatpush3.bf16.msra.mxu1 %v1187_v33 }
 0x123   :  { %1213 = vmatprep.subr.bf16.mxu1 %v1265_v2  ;;  %v340_v2 = vld [vmem:[%s1585_s5] sm:$0x1] }
 0x126   :  { %1215 = vmatpush3.bf16.msra.mxu1 %v1190_v36 }
 0x127   :  { %1015 = vmatprep.subr.bf16.mxu1 %v1238_v12 }
 0x129   :  { %1114 = vmatmul.mubr.f32.vlgmr.msra.gmra.mrb[2].mxu1 %v175_v57 }
 0x12a   :  { %1016 = vmatpush3.bf16.msra.mxu1 %v1239_v13 }
 0x12b   :  { %1017 = vmatprep.subr.bf16.mxu1 %v1240_v14 }
 0x12e   :  { %1018 = vmatpush3.bf16.msra.mxu1 %v1241_v15 }
 0x12f   :  { %1019 = vmatprep.subr.bf16.mxu1 %v1242_v16 }
 0x132   :  { %1020 = vmatpush3.bf16.msra.mxu1 %v1244_v17 }
 0x133   :  { %1021 = vmatprep.subr.bf16.mxu1 %v1245_v18 }
 0x136   :  { %1022 = vmatpush3.bf16.msra.mxu1 %v1247_v19 }
 0x137   :  { %1023 = vmatprep.subr.bf16.mxu1 %v1248_v20 }
 0x13a   :  { %1024 = vmatpush3.bf16.msra.mxu1 %v1250_v21 }
 0x13b   :  { %1025 = vmatprep.subr.bf16.mxu1 %v1251_v45 }
 0x13e   :  { %1026 = vmatpush3.bf16.msra.mxu1 %v1253_v47 }
 0x13f   :  { %1027 = vmatprep.subr.bf16.mxu1 %v1254_v48 }
 0x142   :  { %1028 = vmatpush3.bf16.msra.mxu1 %v1256_v50 }
 0x143   :  { %1029 = vmatprep.subr.bf16.mxu1 %v1257_v51 }
 0x146   :  { %1030 = vmatpush3.bf16.msra.mxu1 %v1259_v53 }
 0x1dc   :  { %v258_v61 = vpop.f32.mrb[0].mxu1 }
 0x1dd   :  { %v1080_v62 = vpop.f32.mrb[1].mxu1  ;;  %v332_v63 = vmul.f32 0.0078125, %v258_v61 }
 0x1df   :  { %v334_v1 = vmul.f32 %v332_v63, %v332_v63 }
 0x1fc   :  { %v328_v0 = vpop.f32.mrb[2].mxu1 }
 0x1fd   :  { %v333_v3 = vmul.f32 0.0078125, %v328_v0  ;;  %v1115_v4 = vpop.f32.mrb[3].mxu1 }
 0x1ff   :  { %v335_v5 = vsub.f32 %v333_v3, %v334_v1 }
 0x201   :  { %v337_v6 = vadd.f32 1e-05, %v335_v5 }
 0x203   :  { %1262 = vrsqrt.f32 %v337_v6 }
 0x20d   :  { %v1263_v8 = vpop.eup %1262 }
 0x20e   :  { %v339_v9 = vmul.f32 %v1263_v8, %v336_v7 }
 0x210   :  { %1121 = vmatmul.mubr.msk.f32.vlgmr.msra.gmra.mrb[4].mxu0 %vm115_vm0, %v339_v9  ;;  %v341_v10 = vmul.f32 %v339_v9, %v332_v63 }
 0x211   :  { %1221 = vmatpush3.bf16.msra.mxu0 %v1217_v60  ;;  %1127 = vmatprep.mubr.msk.f32.mxu0 %vm1266_vm1, %v1267_v37 }
 0x212   :  { %v342_v11 = vsub.f32 %v340_v2, %v341_v10  ;;  %1130 = vmatprep.subr.bf16.mxu0 %v1267_v37 }
 0x214   :  { %1128 = vmatmul.mubr.msk.f32.vlgmr.msra.gmra.mrb[6].mxu0 %vm115_vm0, %v342_v11 }
 0x215   :  { %1132 = vmatprep.mubr.msk.bf16.mxu0 %vm1266_vm1, %v1267_v37 }
 0x2e3   :  { %v414_v25 = vpop.f32.mrb[4].mxu0 }
 0x2e4   :  { %v494_v26 = vrot.slane %v414_v25, %v493_v24  ;;  %v1122_v27 = vpop.f32.mrb[5].mxu0 }
 0x2e6   :  { %v495_v28 = vmul.f32 %v494_v26, %v1426_v38  ;;  %v496_v29 = vmul.f32 %v494_v26, %v1428_v40  ;;  %v508_v38 = vld [vmem:[%s1588_s2] sm:$0xf]  ;;  %v941_v40 = vld [vmem:[%s1588_s2 + $0x4] sm:$0xf] }
 0x2e7   :  { %v487_v30 = vpop.f32.mrb[6].mxu0 }
 0x2e8   :  { %v500_v31 = vrot.slane %v487_v30, %v493_v24  ;;  %v1129_v32 = vpop.f32.mrb[7].mxu0 }
 0x2ea   :  { %v501_v33 = vadd.f32 %v500_v31, %v495_v28  ;;  %v502_v34 = vadd.f32 %v500_v31, %v496_v29 }
 0x2ec   :  { %v503_v35 = vmax.f32 %v501_v33, 0.0  ;;  %v504_v36 = vmax.f32 %v502_v34, 0.0 }
 0x2ee   :  { %505 = vst [vmem:[%s1587_s8] sm:$0xff] %v503_v35  ;;  %506 = vst [vmem:[%s1587_s8 + $0x8] sm:$0xff] %v504_v36  ;;  %v507_v39 = vpack.c.bf16 %v504_v36, %v503_v35 }
 0x2f0   :  { %1131 = vmatpush3.bf16.msra.mxu0 %v507_v39 }
 0x2f1   :  { %1136 = vmatprep.subr.bf16.mxu0 %v1267_v37 }
 0x2f3   :  { %1133 = vmatmul.mubr.msk.bf16.vlgmr.msra.gmra.mrb[8].mxu0 %vm115_vm0, %v508_v38 }
 0x2f4   :  { %1137 = vmatpush3.bf16.msra.mxu0 %v507_v39  ;;  %1138 = vmatprep.mubr.msk.bf16.mxu0 %vm1266_vm1, %v1267_v37 }
 0x2f5   :  { %1142 = vmatprep.subr.bf16.mxu0 %v1267_v37 }
 0x2fb   :  { %1139 = vmatmul.mubr.msk.bf16.vlgmr.msra.gmra.mrb[12].mxu0 %vm115_vm0, %v941_v40 }
 0x2fc   :  { %1143 = vmatpush3.bf16.msra.mxu0 %v507_v39  ;;  %1144 = vmatprep.mubr.msk.bf16.mxu0 %vm1266_vm1, %v1267_v37 }
 0x2fd   :  { %1148 = vmatprep.subr.bf16.mxu0 %v1267_v37 }
 0x303   :  { %1145 = vmatmul.mubr.msk.bf16.vlgmr.msra.gmra.mrb[16].mxu0 %vm115_vm0, %v943_v41 }
 0x304   :  { %1149 = vmatpush3.bf16.msra.mxu0 %v1243_v42  ;;  %1164 = vmatprep.mubr.msk.bf16.mxu0 %vm1266_vm1, %v1267_v37 }
 0x305   :  { %1150 = vmatprep.subr.bf16.mxu0 %v1267_v37 }
 0x308   :  { %1151 = vmatpush3.bf16.msra.mxu0 %v1246_v43 }
 0x309   :  { %1152 = vmatprep.subr.bf16.mxu0 %v1267_v37 }
 0x30c   :  { %1153 = vmatpush3.bf16.msra.mxu0 %v1249_v44 }
 0x30d   :  { %1154 = vmatprep.subr.bf16.mxu0 %v1267_v37 }
 0x310   :  { %1155 = vmatpush3.bf16.msra.mxu0 %v1252_v46 }
 0x311   :  { %1156 = vmatprep.subr.bf16.mxu0 %v1267_v37 }
 0x314   :  { %1157 = vmatpush3.bf16.msra.mxu0 %v1255_v49 }
 0x315   :  { %1158 = vmatprep.subr.bf16.mxu0 %v1267_v37 }
 0x318   :  { %1159 = vmatpush3.bf16.msra.mxu0 %v1258_v52 }
 0x319   :  { %1160 = vmatprep.subr.bf16.mxu0 %v1267_v37 }
 0x31c   :  { %1161 = vmatpush3.bf16.msra.mxu0 %v1260_v54 }
 0x31d   :  { %1162 = vmatprep.subr.bf16.mxu0 %v1267_v37 }
 0x320   :  { %1163 = vmatpush3.bf16.msra.mxu0 %v1261_v55 }
 0x3c6   :  { %v546_v56 = vpop.f32.mrb[8].mxu0 }
 0x3c7   :  { %v1134_v57 = vpop.f32.mrb[9].mxu0  ;;  %v642_v63 = vpack.c.bf16 %v546_v56, %v546_v56 }
 0x3c8   :  { %v549_v58 = vpop.f32.mrb[10].mxu0 }
 0x3c9   :  { %v1135_v59 = vpop.f32.mrb[11].mxu0 }
 0x3ce   :  { %v591_v60 = vpop.f32.mrb[12].mxu0 }
 0x3cf   :  { %v643_v61 = vpack.c.bf16 %v591_v60, %v591_v60  ;;  %v1140_v62 = vpop.f32.mrb[13].mxu0 }
 0x3d0   :  { %v594_v0 = vpop.f32.mrb[14].mxu0 }
 0x3d1   :  { %v1141_v1 = vpop.f32.mrb[15].mxu0  ;;  %869 = vmatprep.mubr.bf16.mxu1 %v643_v61 }
 0x3d2   :  { %870 = vmatmul.mubr.bf16.vlgmr.msra.gmra.mrb[4].mxu1 %v642_v63 }
 0x3d6   :  { %v636_v3 = vpop.f32.mrb[16].mxu0 }
 0x3d7   :  { %v644_v4 = vpack.c.bf16 %v636_v3, %v636_v3  ;;  %v1146_v37 = vpop.f32.mrb[17].mxu0 }
 0x3d8   :  { %v639_v5 = vpop.f32.mrb[18].mxu0 }
 0x3d9   :  { %v1147_v6 = vpop.f32.mrb[19].mxu0  ;;  %1165 = vmatmul.mubr.bf16.vlgmr.msra.gmra.mrb[20].mxu0 %v644_v4 }
 0x4a5   :  { %v1031_v7 = vpop.f32.mrb[4].mxu1 }
 0x4a6   :  { %v1032_v8 = vpop.f32.mrb[5].mxu1 }
 0x4a7   :  { %v1033_v9 = vadd.f32 %v1032_v8, %v1031_v7  ;;  %v1034_v2 = vpop.f32.mrb[6].mxu1 }
 0x4a8   :  { %v1035_v10 = vpop.f32.mrb[7].mxu1 }
 0x4ac   :  { %v911_v11 = vpop.f32.mrb[20].mxu0 }
 0x4ad   :  { %v912_v12 = vadd.f32 %v1033_v9, %v911_v11  ;;  %v1166_v13 = vpop.f32.mrb[21].mxu0 }
 0x4ae   :  { %v914_v14 = vpop.f32.mrb[22].mxu0 }
 0x4af   :  { %917 = vst [vmem:[%s1589_s9] sm:$0xff] %v912_v12  ;;  %v1167_v15 = vpop.f32.mrb[23].mxu0 }

</bundles_post_ra>
